<compile_context>
chip_gen: v7x
topology: tpu7x:2x2x1
jax: 0.10.0
libtpu: 0.0.40
codegen_flags: <defaults>
</compile_context>

<pallas_src>
import functools

import jax
import jax.numpy as jnp
from jax.experimental import pallas as pl
from jax.experimental.pallas import tpu as pltpu


def _lrelu_kernel(x_ref, o_ref, *, c):
    # x_ref / o_ref: (tm, tn) VMEM tiles. Pure VPU work; the DMA stream is the
    # only cost that matters.
    x = x_ref[...]
    y = jnp.where(x >= 0, x, x * c)        # leaky_relu(x, c)
    o_ref[...] = jnp.clip(y, -3.0, 3.0)    # clamp to [-3, 3]


def lrelu(x, c=1.0 / 3, *, tm=512, tn=1024):
    """clamp(leaky_relu(x, c), -3, 3), elementwise, any shape, dtype preserved."""
    orig_shape = x.shape
    orig_dtype = x.dtype
    n = x.size

    # Lane dimension: 1024 lanes for large inputs; for tiny inputs use the
    # smallest 128-aligned width that covers the whole tensor.
    tn = min(tn, max(128, pl.cdiv(n, 128) * 128))

    # Pad only to a multiple of tn (usually a no-op for real activation sizes).
    n_pad = pl.cdiv(n, tn) * tn
    xf = jnp.ravel(x)
    if n_pad != n:
        xf = jnp.pad(xf, (0, n_pad - n))
    rows = n_pad // tn
    x2d = xf.reshape(rows, tn)

    # Sublane tile: clamp tm to the (8-aligned) number of rows; the ragged
    # last row-block (rows % tm != 0) is handled by the cdiv grid below.
    tm = min(tm, pl.cdiv(rows, 8) * 8)
    grid = (pl.cdiv(rows, tm),)

    out2d = pl.pallas_call(
        functools.partial(_lrelu_kernel, c=float(c)),
        out_shape=jax.ShapeDtypeStruct((rows, tn), orig_dtype),
        grid_spec=pltpu.PrefetchScalarGridSpec(
            num_scalar_prefetch=0,
            grid=grid,
            in_specs=[pl.BlockSpec((tm, tn), lambda i: (i, 0))],
            out_specs=pl.BlockSpec((tm, tn), lambda i: (i, 0)),
        ),
        # The flattened slab is a throwaway intermediate -> write the result
        # in place to halve peak HBM footprint (XLA copies defensively if the
        # operand buffer is still live).
        input_output_aliases={0: 0},
        compiler_params=pltpu.CompilerParams(
            dimension_semantics=("parallel",),
        ),
    )(x2d)

    out = out2d.reshape(-1)
    if n_pad != n:
        out = out[:n]
    return out.reshape(orig_shape)


def _lrelu_ref(x, c=1.0 / 3):
    y = jnp.where(x >= 0, x, x * c)
    return jnp.clip(y, -3.0, 3.0)


if __name__ == "__main__":
    key = jax.random.PRNGKey(0)

    # Small NCHW input consistent with a conv-net activation.
    x = jax.random.normal(key, (2, 4, 16, 16), dtype=jnp.float32) * 5.0
    out = lrelu(x)
    jax.block_until_ready(out)
    ref = _lrelu_ref(x)
    assert out.shape == x.shape and out.dtype == x.dtype
    assert jnp.allclose(out, ref, atol=1e-6, rtol=1e-6)

    # Ragged size (not a multiple of the 1024-lane slab width) to exercise the
    # tail-padding / cdiv-grid path.
    x2 = jax.random.normal(jax.random.PRNGKey(0), (2, 3, 17, 19), jnp.float32) * 5.0
    out2 = lrelu(x2)
    jax.block_until_ready(out2)
    assert out2.shape == x2.shape and out2.dtype == x2.dtype
    assert jnp.allclose(out2, _lrelu_ref(x2), atol=1e-6, rtol=1e-6)

    print("KERNEL_OK")
</pallas_src>

<mosaic_0001>
module attributes {stable_mosaic.version = 11 : i64} {
  func.func @_lrelu_kernel(%arg0: i32, %arg1: memref<8x1024xf32, #tpu.memory_space<vmem>>, %arg2: memref<8x1024xf32, #tpu.memory_space<vmem>>) attributes {dimension_semantics = [#tpu.dimension_semantics<parallel>], iteration_bounds = array<i64: 1>, scalar_prefetch = 0 : i64, scratch_operands = 0 : i64, tpu.core_type = #tpu.core_type<tc>, window_params = [{transform_indices = @transform_0, window_bounds = array<i64: 8, 1024>}, {transform_indices = @transform_1, window_bounds = array<i64: 8, 1024>}]} {
    %c0 = arith.constant 0 : index
    %c0_0 = arith.constant 0 : index
    %0 = vector.load %arg1[%c0, %c0_0] : memref<8x1024xf32, #tpu.memory_space<vmem>>, vector<8x1024xf32>
    %cst = arith.constant 0.000000e+00 : f32
    %1 = vector.broadcast %cst : f32 to vector<8x1024xf32>
    %2 = arith.cmpf oge, %0, %1 : vector<8x1024xf32>
    %cst_1 = arith.constant 0.333333343 : f32
    %3 = vector.broadcast %cst_1 : f32 to vector<8x1024xf32>
    %4 = arith.mulf %0, %3 : vector<8x1024xf32>
    %5 = arith.select %2, %0, %4 : vector<8x1024xi1>, vector<8x1024xf32>
    %cst_2 = arith.constant -3.000000e+00 : f32
    %cst_3 = arith.constant 3.000000e+00 : f32
    %6 = vector.broadcast %cst_2 : f32 to vector<8x1024xf32>
    %7 = arith.maximumf %6, %5 : vector<8x1024xf32>
    %8 = vector.broadcast %cst_3 : f32 to vector<8x1024xf32>
    %9 = arith.minimumf %8, %7 : vector<8x1024xf32>
    %c0_4 = arith.constant 0 : index
    %c0_5 = arith.constant 0 : index
    %10 = vector.load %arg2[%c0_4, %c0_5] : memref<8x1024xf32, #tpu.memory_space<vmem>>, vector<8x1024xf32>
    tpu.vector_store %arg2[%c0_4, %c0_5], %9 {strides = array<i32>} : memref<8x1024xf32, #tpu.memory_space<vmem>>, vector<8x1024xf32>,
    return
  }
  func.func @transform_0(%arg0: i32) -> (i32, i32) {
    %c0_i32 = arith.constant 0 : i32
    %c0_i32_0 = arith.constant 0 : i32
    return %arg0, %c0_i32 : i32, i32
  }
  func.func @transform_1(%arg0: i32) -> (i32, i32) {
    %c0_i32 = arith.constant 0 : i32
    %c0_i32_0 = arith.constant 0 : i32
    return %arg0, %c0_i32 : i32, i32
  }
}

</mosaic_0001>

<bundles_post_ra>
// kernel: tpu_custom_call.1
= control target key start
LH: loop header
LB: loop body
LE: loop exit
PB: predicated region body
PF: predicated region fallthrough
CT: control target
= control target key end

     0   :  { %6 = vsyncpa [#allocation3], 0  ;;  %s200_s0 = inlined_call_operand.hbm [shape: f32[2,1024], index: 0, kind: input, shape index: {}, may-alias: {0,1}]   ;;  %s201_s1 = inlined_call_operand.hbm [shape: f32[2,1024], index: 1, kind: output, shape index: {}, may-alias: {0,1}]  }
   0x1   :  { %7 = vsyncpa [#allocation4], 0 }
   0x2   :  { %12 = vsyncadd [#allocation3], 768  ;;  %s156_s6 = smov [#allocation2]   ;;  %s108_s10 = scalar_lea.hbm %s200_s0, 256 }
   0x3   :  { %s13_s7 = sshll.u32 %s156_s6, 4  ;;  %p109_p0 = scmp.ne.s32.totalorder %s200_s0, %s108_s10  ;;  %s14_s7 = int_to_ptr.vmem [resolvable:$true] %s13_s7 }
   0x4   :  { %p112_p1 = scmp.lt.u32.totalorder %s108_s10, %s200_s0 }
   0x6   :  { %p114_p2 = pnand %p112_p1, %p109_p0 }
   0x8   :  { %117 = shalt.err (!%p114_p2)
}
   0x9   :  { %s118_s15 = scalar_lea.vmem %s14_s7, 256  ;;  %s122_s16 = scalar_lea.vmem %s14_s7, 1024 }
   0xa   :  { %p119_p3 = scmp.ne.s32.totalorder %s14_s7, %s118_s15  ;;  %p123_p4 = scmp.lt.s32.totalorder %s14_s7, %s14_s7 }
   0xb   :  { %p124_p5 = scmp.lt.s32.totalorder %s122_s16, %s118_s15 }
   0xd   :  { %p125_p6 = por %p124_p5, %p123_p4 }
   0xf   :  { %p126_p7 = pnand %p125_p6, %p119_p3 }
  0x11   :  { %129 = shalt.err (!%p126_p7)
}
  0x12   :  { %s157_s17 = smov 256   ;;  %s158_s18 = smov 16  }
  0x13   :  { %19 = dma.hbm_to_vmem [thread:$0]  %s200_s0, 256, %s14_s7, [#allocation3], %s157_s17, %s157_s17, %s158_s18  }
  0x14   :  { %152 = dma.done.wait [#allocation3], 1024  }
  0x15   :  { %153 = vsyncadd [#allocation3], 4294966272  ;;  %v23_v0 = vld [vmem:[#allocation2] sm:$0xff]  ;;  %v24_v1 = vld [vmem:[#allocation2 + $0x8] sm:$0xff] }
  0x16   :  { %v25_v2 = vld [vmem:[#allocation2 + $0x10] sm:$0xff]  ;;  %vm31_vm0 = vcmp.ge.f32.partialorder %v23_v0, 0.0  ;;  %v39_v3 = vmul.f32 0.33333334, %v23_v0  ;;  %vm32_vm1 = vcmp.ge.f32.partialorder %v24_v1, 0.0  ;;  %v26_v6 = vld [vmem:[#allocation2 + $0x18] sm:$0xff] }
  0x17   :  { %v40_v4 = vmul.f32 0.33333334, %v24_v1  ;;  %vm33_vm2 = vcmp.ge.f32.partialorder %v25_v2, 0.0  ;;  %v41_v5 = vmul.f32 0.33333334, %v25_v2  ;;  %v27_v7 = vld [vmem:[#allocation2 + $0x20] sm:$0xff] }
  0x18   :  { %v28_v8 = vld [vmem:[#allocation2 + $0x28] sm:$0xff]  ;;  %v47_v9 = vsel %vm31_vm0, %v23_v0, %v39_v3  ;;  %vm34_vm3 = vcmp.ge.f32.partialorder %v26_v6, 0.0  ;;  %v42_v11 = vmul.f32 0.33333334, %v26_v6  ;;  %v29_v12 = vld [vmem:[#allocation2 + $0x30] sm:$0xff]  ;;  %vm35_vm4 = vcmp.ge.f32.partialorder %v27_v7, 0.0 }
  0x19   :  { %v48_v10 = vsel %vm32_vm1, %v24_v1, %v40_v4  ;;  %v96_v13 = vclamps-f32 %v47_v9, 3.0  ;;  %v49_v15 = vsel %vm33_vm2, %v25_v2, %v41_v5  ;;  %v30_v16 = vld [vmem:[#allocation2 + $0x38] sm:$0xff]  ;;  %v43_v19 = vmul.f32 0.33333334, %v27_v7 }
  0x1a   :  { %v97_v14 = vclamps-f32 %v48_v10, 3.0  ;;  %v98_v17 = vclamps-f32 %v49_v15, 3.0  ;;  %v50_v18 = vsel %vm34_vm3, %v26_v6, %v42_v11  ;;  %vm36_vm5 = vcmp.ge.f32.partialorder %v28_v8, 0.0 }
  0x1b   :  { %71 = vst [vmem:[#allocation5] sm:$0xff] %v96_v13  ;;  %v99_v20 = vclamps-f32 %v50_v18, 3.0  ;;  %v44_v21 = vmul.f32 0.33333334, %v28_v8  ;;  %vm37_vm6 = vcmp.ge.f32.partialorder %v29_v12, 0.0  ;;  %v51_v23 = vsel %vm35_vm4, %v27_v7, %v43_v19 }
  0x1c   :  { %72 = vst [vmem:[#allocation5 + $0x8] sm:$0xff] %v97_v14  ;;  %v45_v22 = vmul.f32 0.33333334, %v29_v12  ;;  %73 = vst [vmem:[#allocation5 + $0x10] sm:$0xff] %v98_v17  ;;  %vm38_vm7 = vcmp.ge.f32.partialorder %v30_v16, 0.0  ;;  %v100_v25 = vclamps-f32 %v51_v23, 3.0 }
  0x1d   :  { %v46_v24 = vmul.f32 0.33333334, %v30_v16  ;;  %74 = vst [vmem:[#allocation5 + $0x18] sm:$0xff] %v99_v20  ;;  %v52_v26 = vsel %vm36_vm5, %v28_v8, %v44_v21 }
  0x1e   :  { %v53_v27 = vsel %vm37_vm6, %v29_v12, %v45_v22  ;;  %v101_v28 = vclamps-f32 %v52_v26, 3.0  ;;  %75 = vst [vmem:[#allocation5 + $0x20] sm:$0xff] %v100_v25 }
  0x1f   :  { %v102_v29 = vclamps-f32 %v53_v27, 3.0  ;;  %v54_v30 = vsel %vm38_vm7, %v30_v16, %v46_v24 }
  0x20   :  { %v103_v31 = vclamps-f32 %v54_v30, 3.0  ;;  %76 = vst [vmem:[#allocation5 + $0x28] sm:$0xff] %v101_v28 }
  0x21   :  { %77 = vst [vmem:[#allocation5 + $0x30] sm:$0xff] %v102_v29 }
  0x22   :  { %78 = vst [vmem:[#allocation5 + $0x38] sm:$0xff] %v103_v31 }
  0x23   :  { %83 = vsyncadd [#allocation4], 768  ;;  %s159_s0 = smov [#allocation5]  }
  0x24   :  { %s84_s21 = sshll.u32 %s159_s0, 4  ;;  %s85_s21 = int_to_ptr.vmem [resolvable:$true] %s84_s21 }
  0x25   :  { %s130_s22 = scalar_lea.vmem %s85_s21, 256  ;;  %s134_s23 = scalar_lea.vmem %s85_s21, 1024 }
  0x26   :  { %p131_p8 = scmp.ne.s32.totalorder %s85_s21, %s130_s22  ;;  %p135_p9 = scmp.lt.s32.totalorder %s85_s21, %s85_s21 }
  0x27   :  { %p136_p10 = scmp.lt.s32.totalorder %s134_s23, %s130_s22 }
  0x29   :  { %p137_p11 = por %p136_p10, %p135_p9 }
  0x2b   :  { %p138_p12 = pnand %p137_p11, %p131_p8 }
  0x2d   :  { %141 = shalt.err (!%p138_p12)
}
  0x2e   :  { %s142_s26 = scalar_lea.hbm %s201_s1, 256 }
  0x2f   :  { %p143_p13 = scmp.ne.s32.totalorder %s201_s1, %s142_s26  ;;  %p146_p0 = scmp.lt.u32.totalorder %s142_s26, %s201_s1 }
  0x31   :  { %p148_p1 = pnand %p146_p0, %p143_p13 }
  0x33   :  { %151 = shalt.err (!%p148_p1)
}
  0x34   :  { %90 = dma.vmem_to_hbm [thread:$0]  %s85_s21, 256, %s201_s1, [#allocation4], %s157_s17, %s157_s17, %s158_s18  }
  0x35   :  { %154 = dma.done.wait [#allocation4], 1024  }
  0x36   :  { %155 = vsyncadd [#allocation4], 4294966272 }
  0x37   :  { %94 = vsyncpa [#allocation3], 1 }
  0x38   :  { %95 = vsyncpa [#allocation4], 1 }

</bundles_post_ra>
